<compile_context>
chip_gen: v7x
topology: tpu7x:2x2x1
jax: 0.10.0
libtpu: 0.0.40
codegen_flags: <defaults>
</compile_context>

<pallas_src>
import math
import functools

import jax
import jax.numpy as jnp
from jax.experimental import pallas as pl
from jax.experimental.pallas import tpu as pltpu


def _attn_kernel(q_ref, k_ref, v_ref, o_ref, *, inv_scale):
    # refs are (hb, S, D) — a chunk of fused heads.
    # bf16 operands on the MXU (all generations are bf16-native), f32 accumulation.
    q = q_ref[...].astype(jnp.bfloat16)                       # (hb, S, D)
    k = k_ref[...].astype(jnp.bfloat16)                       # (hb, S, D)

    # scores = q @ k^T per head, batched contraction over the last dims
    # (no materialized transpose / XLU pass).
    s = jnp.einsum("bqd,bkd->bqk", q, k,
                   preferred_element_type=jnp.float32)        # (hb, S, S) f32
    s = s * inv_scale

    # numerically-stable softmax along the last dim, all in f32;
    # exact division (approx reciprocal was not accurate enough).
    m = jnp.max(s, axis=-1, keepdims=True)
    e = jnp.exp(s - m)
    denom = jnp.sum(e, axis=-1, keepdims=True)
    p = e / denom

    # dropout with p=0.0 is identity (eval-mode Dropout)

    out = jnp.einsum("bqk,bkd->bqd",
                     p.astype(jnp.bfloat16),
                     v_ref[...].astype(jnp.bfloat16),
                     preferred_element_type=jnp.float32)      # (hb, S, D) f32
    o_ref[...] = out.astype(o_ref.dtype)                      # lane-dense (D=128) store


def attention(query, key, value):
    # query/key/value: (B, H, S, D) float32
    B, H, S, D = query.shape
    BH = B * H
    inv_scale = 1.0 / math.sqrt(D)

    qf = query.reshape(BH, S, D)
    kf = key.reshape(BH, S, D)
    vf = value.reshape(BH, S, D)

    # Always split into an even number (2) of head blocks so both v7x
    # TensorCores get work; pad the head axis if BH is odd.  Capped at 2
    # blocks: on single-TC v5e/v6e extra grid steps only add ~0.35us each.
    if BH >= 2:
        heads_per_block = pl.cdiv(BH, 2)
        bh_padded = 2 * heads_per_block
    else:
        heads_per_block = BH
        bh_padded = BH
    n_blocks = bh_padded // heads_per_block

    if bh_padded != BH:
        pad = bh_padded - BH
        qf = jnp.pad(qf, ((0, pad), (0, 0), (0, 0)))
        kf = jnp.pad(kf, ((0, pad), (0, 0), (0, 0)))
        vf = jnp.pad(vf, ((0, pad), (0, 0), (0, 0)))

    spec = pl.BlockSpec((heads_per_block, S, D), lambda i: (i, 0, 0))

    cost = pl.CostEstimate(
        flops=4 * BH * S * S * D,          # two matmuls, 2*S*S*D flops each per head
        transcendentals=BH * S * S,        # exp in the softmax
        bytes_accessed=4 * BH * S * D * 4  # q, k, v read + o write (f32)
    )

    out = pl.pallas_call(
        functools.partial(_attn_kernel, inv_scale=inv_scale),
        out_shape=jax.ShapeDtypeStruct((bh_padded, S, D), query.dtype),
        grid_spec=pltpu.PrefetchScalarGridSpec(
            num_scalar_prefetch=0,
            grid=(n_blocks,),
            in_specs=[spec, spec, spec],
            out_specs=spec,
        ),
        compiler_params=pltpu.CompilerParams(
            dimension_semantics=("parallel",)
        ),
        cost_estimate=cost,
    )(qf, kf, vf)

    return out[:BH].reshape(B, H, S, D)


def _reference(query, key, value, operand_dtype=jnp.float32):
    # Pure-JAX reference of the PyTorch forward.  operand_dtype lets us also
    # build a bf16-operand reference matching the kernel's MXU input rounding.
    D = query.shape[-1]
    q = query.astype(operand_dtype)
    k = key.astype(operand_dtype)
    v = value.astype(operand_dtype)
    s = jnp.einsum("bhqd,bhkd->bhqk", q, k,
                   preferred_element_type=jnp.float32) * (1.0 / math.sqrt(D))
    p = jax.nn.softmax(s, axis=-1)
    return jnp.einsum("bhqk,bhkd->bhqd", p.astype(operand_dtype), v,
                      preferred_element_type=jnp.float32)


if __name__ == "__main__":
    key0 = jax.random.PRNGKey(0)
    kq, kk, kv = jax.random.split(key0, 3)
    B, H, S, D = 1, 6, 64, 128
    query = jax.random.normal(kq, (B, H, S, D), dtype=jnp.float32)
    key_t = jax.random.normal(kk, (B, H, S, D), dtype=jnp.float32)
    value = jax.random.normal(kv, (B, H, S, D), dtype=jnp.float32)

    out = attention(query, key_t, value)
    out = jax.block_until_ready(out)
    assert out.shape == (B, H, S, D)

    # Structural correctness: kernel vs. a reference that uses the same bf16
    # operand rounding — these should agree to f32 round-off.
    ref_bf16_ops = _reference(query, key_t, value, operand_dtype=jnp.bfloat16)
    assert jnp.allclose(out, ref_bf16_ops, atol=2e-3, rtol=2e-3)

    # End-to-end accuracy vs. the full-f32 reference; tolerance accounts for
    # the bf16 rounding of the MXU operands (softmax itself is in f32).
    ref_f32 = _reference(query, key_t, value)
    assert jnp.allclose(out, ref_f32, atol=2e-2, rtol=2e-2)

    print("KERNEL_OK")
</pallas_src>

<mosaic_0001>
module attributes {stable_mosaic.version = 11 : i64} {
  func.func @_attn_kernel(%arg0: i32, %arg1: memref<3x64x128xf32, #tpu.memory_space<vmem>>, %arg2: memref<3x64x128xf32, #tpu.memory_space<vmem>>, %arg3: memref<3x64x128xf32, #tpu.memory_space<vmem>>, %arg4: memref<3x64x128xf32, #tpu.memory_space<vmem>>) attributes {dimension_semantics = [#tpu.dimension_semantics<parallel>], iteration_bounds = array<i64: 2>, scalar_prefetch = 0 : i64, scratch_operands = 0 : i64, tpu.core_type = #tpu.core_type<tc>, window_params = [{transform_indices = @transform_0, window_bounds = array<i64: 3, 64, 128>}, {transform_indices = @transform_1, window_bounds = array<i64: 3, 64, 128>}, {transform_indices = @transform_2, window_bounds = array<i64: 3, 64, 128>}, {transform_indices = @transform_3, window_bounds = array<i64: 3, 64, 128>}]} {
    %c0 = arith.constant 0 : index
    %c0_0 = arith.constant 0 : index
    %c0_1 = arith.constant 0 : index
    %0 = vector.load %arg1[%c0, %c0_0, %c0_1] : memref<3x64x128xf32, #tpu.memory_space<vmem>>, vector<3x64x128xf32>
    %1 = arith.truncf %0 : vector<3x64x128xf32> to vector<3x64x128xbf16>
    %c0_2 = arith.constant 0 : index
    %c0_3 = arith.constant 0 : index
    %c0_4 = arith.constant 0 : index
    %2 = vector.load %arg2[%c0_2, %c0_3, %c0_4] : memref<3x64x128xf32, #tpu.memory_space<vmem>>, vector<3x64x128xf32>
    %3 = arith.truncf %2 : vector<3x64x128xf32> to vector<3x64x128xbf16>
    "tpu.trace_start"() <{level = 10 : i32, message = "bqd,bkd->bqk"}> : () -> ()
    %cst = arith.constant dense<0.000000e+00> : vector<3x64x64xf32>
    %4 = tpu.matmul %1, %3, %cst {dimension_numbers = #tpu.dot_dimension_numbers<[2], [2], [1], [1], [0, 0, 0, 1, 1, 1], [0], [0]>} : vector<3x64x128xbf16>, vector<3x64x128xbf16>, vector<3x64x64xf32> -> vector<3x64x64xf32>
    "tpu.trace_stop"() : () -> ()
    %cst_5 = arith.constant 0.0883883461 : f32
    %5 = vector.broadcast %cst_5 : f32 to vector<3x64x64xf32>
    %6 = arith.mulf %4, %5 : vector<3x64x64xf32>
    %cst_6 = arith.constant dense<0xFF800000> : vector<3x64xf32>
    %7 = vector.multi_reduction <maximumf>, %6, %cst_6 [2] : vector<3x64x64xf32> to vector<3x64xf32>
    %8 = vector.shape_cast %7 : vector<3x64xf32> to vector<3x64x1xf32>
    %9 = vector.broadcast %8 : vector<3x64x1xf32> to vector<3x64x64xf32>
    %10 = arith.subf %6, %9 : vector<3x64x64xf32>
    %11 = math.exp %10 : vector<3x64x64xf32>
    %cst_7 = arith.constant dense<0.000000e+00> : vector<3x64xf32>
    %12 = vector.multi_reduction <add>, %11, %cst_7 [2] : vector<3x64x64xf32> to vector<3x64xf32>
    %13 = vector.shape_cast %12 : vector<3x64xf32> to vector<3x64x1xf32>
    %14 = vector.broadcast %13 : vector<3x64x1xf32> to vector<3x64x64xf32>
    %15 = arith.divf %11, %14 : vector<3x64x64xf32>
    %16 = arith.truncf %15 : vector<3x64x64xf32> to vector<3x64x64xbf16>
    %c0_8 = arith.constant 0 : index
    %c0_9 = arith.constant 0 : index
    %c0_10 = arith.constant 0 : index
    %17 = vector.load %arg3[%c0_8, %c0_9, %c0_10] : memref<3x64x128xf32, #tpu.memory_space<vmem>>, vector<3x64x128xf32>
    %18 = arith.truncf %17 : vector<3x64x128xf32> to vector<3x64x128xbf16>
    "tpu.trace_start"() <{level = 10 : i32, message = "bqk,bkd->bqd"}> : () -> ()
    %cst_11 = arith.constant dense<0.000000e+00> : vector<3x64x128xf32>
    %19 = tpu.matmul %16, %18, %cst_11 {dimension_numbers = #tpu.dot_dimension_numbers<[2], [1], [1], [2], [0, 0, 0, 1, 1, 2], [0], [0]>} : vector<3x64x64xbf16>, vector<3x64x128xbf16>, vector<3x64x128xf32> -> vector<3x64x128xf32>
    "tpu.trace_stop"() : () -> ()
    %c0_12 = arith.constant 0 : index
    %c0_13 = arith.constant 0 : index
    %c0_14 = arith.constant 0 : index
    %20 = vector.load %arg4[%c0_12, %c0_13, %c0_14] : memref<3x64x128xf32, #tpu.memory_space<vmem>>, vector<3x64x128xf32>
    tpu.vector_store %arg4[%c0_12, %c0_13, %c0_14], %19 {strides = array<i32>} : memref<3x64x128xf32, #tpu.memory_space<vmem>>, vector<3x64x128xf32>,
    return
  }
  func.func @transform_0(%arg0: i32) -> (i32, i32, i32) {
    %c0_i32 = arith.constant 0 : i32
    %c0_i32_0 = arith.constant 0 : i32
    %c0_i32_1 = arith.constant 0 : i32
    return %arg0, %c0_i32, %c0_i32_0 : i32, i32, i32
  }
  func.func @transform_1(%arg0: i32) -> (i32, i32, i32) {
    %c0_i32 = arith.constant 0 : i32
    %c0_i32_0 = arith.constant 0 : i32
    %c0_i32_1 = arith.constant 0 : i32
    return %arg0, %c0_i32, %c0_i32_0 : i32, i32, i32
  }
  func.func @transform_2(%arg0: i32) -> (i32, i32, i32) {
    %c0_i32 = arith.constant 0 : i32
    %c0_i32_0 = arith.constant 0 : i32
    %c0_i32_1 = arith.constant 0 : i32
    return %arg0, %c0_i32, %c0_i32_0 : i32, i32, i32
  }
  func.func @transform_3(%arg0: i32) -> (i32, i32, i32) {
    %c0_i32 = arith.constant 0 : i32
    %c0_i32_0 = arith.constant 0 : i32
    %c0_i32_1 = arith.constant 0 : i32
    return %arg0, %c0_i32, %c0_i32_0 : i32, i32, i32
  }
}

</mosaic_0001>

<bundles_post_ra>
// kernel: tpu_custom_call.1
= control target key start
LH: loop header
LB: loop body
LE: loop exit
PB: predicated region body
PF: predicated region fallthrough
CT: control target
= control target key end

     0   :  { %s2450_s0 = inlined_call_operand.hbm [shape: f32[6,64,128], index: 0, kind: input, shape index: {}]   ;;  %s2451_s1 = inlined_call_operand.hbm [shape: f32[6,64,128], index: 1, kind: input, shape index: {}]   ;;  %s2452_s2 = inlined_call_operand.hbm [shape: f32[6,64,128], index: 2, kind: input, shape index: {}]   ;;  %s2453_s3 = inlined_call_operand.hbm [shape: f32[6,64,128], index: 3, kind: output, shape index: {}]  }
   0x1   :  { %2460 = sst [smem:[#allocation12_spill]] %s2450_s0 }
   0x2   :  { %8 = vsyncpa [#allocation3], 0 }
   0x3   :  { %10 = vsyncpa [#allocation3 + $0x1], 0 }
   0x4   :  { %11 = vsyncpa [#allocation6], 0 }
   0x5   :  { %13 = vsyncpa [#allocation6 + $0x1], 0 }
   0x6   :  { %14 = vsyncpa [#allocation4], 0 }
   0x7   :  { %16 = vsyncpa [#allocation4 + $0x1], 0  ;;  %s1804_s12 = smov 0   ;;  %s1806_s13 = smov 0  }
   0x8   :  { %s1808_s14 = smov 0   ;;  %s1810_s15 = smov 0  }
   0x9 LB: > { %s1825_s16 = sadd.s32 4294967295, %s1774_s15   ;;  %s1264_s17 = sadd.s32 4294967294, %s1774_s15   ;;  %s1774_s15 = sphi %s1810_s15, %s2479_s15   ;;  %s1770_s14 = sphi %s1808_s14, %s2478_s14   ;;  %s1766_s13 = sphi %s1806_s13, %s2477_s13   ;;  %s1762_s12 = sphi %s1804_s12, %s2476_s12  }
   0xa   : > { %s1829_s18 = sadd.s32 1, %s1774_s15   ;;  %s29_s19 = sadd.s32 1, %s1770_s14 }
   0xb   : > { %s26_s20 = ssub.s32 %s1774_s15, %s1829_s18  ;;  %p36_p0 = scmp.ne.s32.totalorder %s1770_s14, %s1766_s13 }
   0xc   : > { %p27_p1 = scmp.eq.s32.totalorder %s26_s20, 0  ;;  %p37_p2 = scmp.eq.s32.totalorder %s1774_s15, 0 }
   0xd   : > { %p42_p3 = scmp.ne.s32.totalorder %s1766_s13, %s1762_s12  ;;  %p43_p4 = scmp.eq.s32.totalorder %s1825_s16, 0 }
   0xe   : > { %s1841_s21 = scalar_select %p27_p1, %s1770_s14, %s29_s19  }
   0xf   : > { %p38_p5 = por %p37_p2, %p36_p0  ;;  %p1843_p6 = por %p43_p4, %p42_p3 }
  0x10   : > { %p118_p7 = scmp.eq.s32.totalorder %s1825_s16, 1  ;;  %p124_p8 = scmp.eq.s32.totalorder %s1264_s17, 1 }
  0x11   : > { %s2461_s22 = scalar_select %p1843_p6, 1, 0 }
  0x12   : > { %p1480_p10 = scmp.lt.s32.totalorder %s1774_s15, 2  ;;  %p1850_p11 = por %p118_p7, %p36_p0 }
  0x13   : > { %p1854_p12 = por %p124_p8, %p42_p3  ;;  %s144_s25 = sand.u32 1, %s1770_s14  }
  0x14   : > { %s2462_s23 = scalar_select %p1850_p11, 1, 0 }
  0x15   : > { %s2463_s24 = scalar_select %p1854_p12, 1, 0 }
  0x16   : > { %s1860_s26 = smul.u32 3072, %s1774_s15  ;;  %p1866_p13 = pnand %p1480_p10, %p38_p5 }
  0x17   : > { %s1864_s27 = smul.u32 192, %s144_s25  ;;  %s166_s29 = sand.u32 1, %s1774_s15  }
  0x18   : > { %s1875_s5 = scalar_lea.hbm %s2451_s1, %s1860_s26  ;;  %s1881_s8 = scalar_lea.sflag [#allocation6], %s166_s29 }
  0x19   : > { %s170_s6 = scalar_lea.vmem [#allocation5], %s1864_s27  ;;  %s1614_s9 = scalar_lea.hbm %s1875_s5, 3072 }
  0x1a   : > { %s178_s7 = sshll.u32 %s170_s6, 4  ;;  %p1615_p1 = scmp.ne.s32.totalorder %s1875_s5, %s1614_s9  ;;  %s1878_s7 = int_to_ptr.vmem [resolvable:$true] %s178_s7 }
  0x1b   : > { %p1887_p2 = pneg %p1866_p13  ;;  %s1619_s19 = scalar_lea.hbm %s2451_s1, 6144 }
  0x1c   : > { %p1620_p5 = scmp.lt.u32.totalorder %s1875_s5, %s2451_s1  ;;  %p1621_p7 = scmp.lt.u32.totalorder %s1619_s19, %s1614_s9 }
  0x1d   : > { %p1617_p3 = pnand %p1887_p2, %p1615_p1  ;;  %p1623_p10 = scmp.lt.u32.totalorder %s1614_s9, %s1875_s5 }
  0x1e   : > { %p1622_p8 = por %p1621_p7, %p1620_p5 }
  0x1f   : > { %p1618_p4 = pneg %p1617_p3 }
  0x20   : > { %p1624_p9 = por %p1623_p10, %p1622_p8 }
  0x22   : > { %p1625_p0 = pnand %p1624_p9, %p1618_p4 }
  0x24   : > { %1628 = shalt.err (!%p1625_p0)
}
  0x25   : > { %s1629_s29 = scalar_lea.vmem %s1878_s7, 3072  ;;  %s1776_s4 = smov [#allocation5]  }
  0x26   : > { %p1630_p1 = scmp.ne.s32.totalorder %s1878_s7, %s1629_s29  ;;  %s1634_s6 = sshll.u32 %s1776_s4, 4  ;;  %s1635_s6 = int_to_ptr.vmem [resolvable:$false] %s1634_s6 }
  0x27   : > { %s1636_s11 = scalar_lea.vmem %s1635_s6, 6144  ;;  %p1637_p11 = scmp.lt.s32.totalorder %s1878_s7, %s1635_s6 }
  0x28   : > { %p1632_p3 = pnand %p1630_p1, %p1887_p2  ;;  %p1638_p6 = scmp.lt.s32.totalorder %s1636_s11, %s1629_s29 }
  0x2a   : > { %p1633_p12 = pneg %p1632_p3  ;;  %p1639_p5 = por %p1638_p6, %p1637_p11 }
  0x2c   : > { %p1640_p7 = pnand %p1639_p5, %p1633_p12 }
  0x2e   : > { %1643 = shalt.err (!%p1640_p7)
}
  0x2f   : > { %s2456_s9 = smov 128   ;;  %s2458_s17 = smov 8  }
  0x30   : > { %1472 = dma.hbm_to_vmem [thread:$0]  (!%p1866_p13), %s1875_s5, 3072, %s1878_s7, %s1881_s8, %s2456_s9, %s2456_s9, %s2458_s17  }
  0x31   : > { %p208_p6 = scmp.lt.s32.totalorder %s1774_s15, 3  ;;  %s2466_s0 = sld [smem:[#allocation12_spill]] }
  0x32   : > { %p2467_p9 = scmp.ge.s32.totalorder %s1774_s15, 1  ;;  %s148_s4 = scalar_lea.vmem [#allocation2], %s1864_s27 }
  0x33   : > { %s156_s6 = sshll.u32 %s148_s4, 4  ;;  %s1932_s5 = scalar_lea.sflag [#allocation3], %s144_s25  ;;  %s1928_s6 = int_to_ptr.vmem [resolvable:$true] %s156_s6 }
  0x34   : > { %p1923_p11 = pnand %p2467_p9, %p208_p6 }
  0x36   : > { %s2468_s29 = scalar_select %p1923_p11, 1, 0 }
  0x37   : > { %s1919_s30 = scalar_lea.hbm %s2466_s0, %s1860_s26  ;;  %s1649_s20 = scalar_lea.hbm %s2466_s0, 6144 }
  0x38   : > { %s1644_s7 = scalar_lea.hbm %s1919_s30, 3072  ;;  %p1650_p8 = scmp.lt.u32.totalorder %s1919_s30, %s2466_s0 }
  0x39   : > { %p1645_p12 = scmp.ne.s32.totalorder %s1919_s30, %s1644_s7  ;;  %p1651_p10 = scmp.lt.u32.totalorder %s1649_s20, %s1644_s7 }
  0x3a   : > { %p1653_p3 = scmp.lt.u32.totalorder %s1644_s7, %s1919_s30 }
  0x3b   : > { %p1647_p0 = pnand %p1645_p12, %p1887_p2  ;;  %p1652_p1 = por %p1651_p10, %p1650_p8 }
  0x3d   : > { %p1648_p4 = pneg %p1647_p0  ;;  %p1654_p5 = por %p1653_p3, %p1652_p1 }
  0x3f   : > { %p1655_p7 = pnand %p1654_p5, %p1648_p4 }
  0x41   : > { %1658 = shalt.err (!%p1655_p7)
}
  0x42   : > { %s1659_s25 = scalar_lea.vmem %s1928_s6, 3072  ;;  %s1779_s4 = smov [#allocation2]  }
  0x43   : > { %p1660_p6 = scmp.ne.s32.totalorder %s1928_s6, %s1659_s25  ;;  %s1664_s11 = sshll.u32 %s1779_s4, 4  ;;  %s1665_s11 = int_to_ptr.vmem [resolvable:$false] %s1664_s11 }
  0x44   : > { %s1666_s9 = scalar_lea.vmem %s1665_s11, 6144  ;;  %p1667_p0 = scmp.lt.s32.totalorder %s1928_s6, %s1665_s11 }
  0x45   : > { %p1662_p9 = pnand %p1660_p6, %p1887_p2  ;;  %p1668_p11 = scmp.lt.s32.totalorder %s1666_s9, %s1659_s25 }
  0x47   : > { %p1663_p12 = pneg %p1662_p9  ;;  %p1669_p8 = por %p1668_p11, %p1667_p0 }
  0x49   : > { %p1670_p10 = pnand %p1669_p8, %p1663_p12 }
  0x4b   : > { %1673 = shalt.err (!%p1670_p10)
}
  0x4c   : > { %s2469_s17 = smov 8   ;;  %s2470_s7 = smov 128  }
  0x4d   : > { %1469 = dma.hbm_to_vmem [thread:$0]  (!%p1866_p13), %s1919_s30, 3072, %s1928_s6, %s1932_s5, %s2470_s7, %s2470_s7, %s2469_s17  }
  0x4e   : > { %s1963_s4 = scalar_lea.hbm %s2452_s2, %s1860_s26  ;;  %s192_s25 = scalar_lea.vmem [#allocation7], %s1864_s27 }
  0x4f   : > { %s200_s11 = sshll.u32 %s192_s25, 4  ;;  %s1674_s9 = scalar_lea.hbm %s1963_s4, 3072  ;;  %s1966_s11 = int_to_ptr.vmem [resolvable:$true] %s200_s11 }
  0x50   : > { %p1675_p11 = scmp.ne.s32.totalorder %s1963_s4, %s1674_s9  ;;  %s1679_s6 = scalar_lea.hbm %s2452_s2, 6144 }
  0x51   : > { %p1680_p3 = scmp.lt.u32.totalorder %s1963_s4, %s2452_s2  ;;  %p1681_p5 = scmp.lt.u32.totalorder %s1679_s6, %s1674_s9 }
  0x52   : > { %p1677_p4 = pnand %p1675_p11, %p1887_p2  ;;  %p1683_p6 = scmp.lt.u32.totalorder %s1674_s9, %s1963_s4 }
  0x53   : > { %p1682_p7 = por %p1681_p5, %p1680_p3 }
  0x54   : > { %p1678_p1 = pneg %p1677_p4 }
  0x55   : > { %p1684_p9 = por %p1683_p6, %p1682_p7 }
  0x57   : > { %p1685_p12 = pnand %p1684_p9, %p1678_p1 }
  0x59   : > { %1688 = shalt.err (!%p1685_p12)
}
  0x5a   : > { %s1689_s27 = scalar_lea.vmem %s1966_s11, 3072  ;;  %s1780_s0 = smov [#allocation7]  }
  0x5b   : > { %p1690_p0 = scmp.ne.s32.totalorder %s1966_s11, %s1689_s27  ;;  %s1694_s19 = sshll.u32 %s1780_s0, 4  ;;  %s1695_s19 = int_to_ptr.vmem [resolvable:$false] %s1694_s19 }
  0x5c   : > { %s1696_s20 = scalar_lea.vmem %s1695_s19, 6144  ;;  %p1697_p11 = scmp.lt.s32.totalorder %s1966_s11, %s1695_s19 }
  0x5d   : > { %p1692_p8 = pnand %p1690_p0, %p1887_p2  ;;  %p1698_p4 = scmp.lt.s32.totalorder %s1696_s20, %s1689_s27 }
  0x5f   : > { %p1693_p10 = pneg %p1692_p8  ;;  %p1699_p3 = por %p1698_p4, %p1697_p11 }
  0x61   : > { %p1700_p5 = pnand %p1699_p3, %p1693_p10 }
  0x63   : > { %1703 = shalt.err (!%p1700_p5)
}
  0x64   : > { %1475 = dma.hbm_to_vmem [thread:$0]  (!%p1866_p13), %s1963_s4, 3072, %s1966_s11, %s1881_s8, %s2470_s7, %s2470_s7, %s2469_s17  }
  0x65   : > { %p2471_p2 = scmp.ne.s32.totalorder %s2468_s29, 0 }
  0x66   : > { %s1996_s10 = sand.u32 (!%p2471_p2), 1, %s1766_s13   ;;  %p2472_p1 = scmp.ne.s32.totalorder (!%p2471_p2), %s2461_s22, 0 }
  0x67   : > { %212 = sbr.rel (%p2471_p2) target bundleno = 958 (0x3be), region = 32  ;;  %s215_s28 = scalar_lea.sflag (!%p2471_p2), [#allocation3], %s1996_s10 }
  0x68   : > { %s1999_s25 = smul.u32 (!%p2471_p2), 192, %s1996_s10 }
  0x6a   : > { %s2003_s9 = scalar_lea.vmem (!%p2471_p2), [#allocation2], %s1999_s25 }
  0x6e   : > { %1749 = dma.done.wait (%p2472_p1), %s215_s28, 3072  }
  0x6f   : > { %1751 = vsyncadd (%p2472_p1), %s215_s28, 4294964224  ;;  %s223_s8 = sand.u32 1, %s1825_s16   ;;  %s2011_s17 = scalar_lea.vmem [#allocation5], %s1999_s25 }
  0x70   : > { %s224_s29 = scalar_lea.sflag [#allocation6], %s223_s8 }
  0x71   : > { %1753 = dma.done.wait (%p2472_p1), %s224_s29, 6144  }
  0x72   : > { %1755 = vsyncadd (%p2472_p1), %s224_s29, 4294961152  ;;  %v310_v0 = vld [vmem:[%s2011_s17] sm:$0xff]  ;;  %v311_v1 = vld [vmem:[%s2011_s17 + $0x8] sm:$0xff]  ;;  %vm565_vm0 = vcmask 523264   ;;  %s2228_s22 = scalar_lea.vmem [#allocation7], %s1999_s25  ;;  %s2373_s7 = scalar_lea.vmem [#allocation8], %s1999_s25 }
  0x73   : > { %v318_v2 = vld [vmem:[%s2011_s17 + $0x40] sm:$0xff]  ;;  %v334_v3 = vpack.c.bf16 %v311_v1, %v310_v0  ;;  %v319_v4 = vld [vmem:[%s2011_s17 + $0x48] sm:$0xff]  ;;  %v312_v5 = vld [vmem:[%s2011_s17 + $0x10] sm:$0xff]  ;;  %s1301_s4 = smul.u32 3072, %s1825_s16  ;;  %s1148_s11 = sshll.u32 %s2373_s7, 4  ;;  %s2403_s11 = int_to_ptr.vmem [resolvable:$true] %s1148_s11 }
  0x74   : > { %v313_v6 = vld [vmem:[%s2011_s17 + $0x18] sm:$0xff]  ;;  %v338_v7 = vpack.c.bf16 %v319_v4, %v318_v2  ;;  %v320_v9 = vld [vmem:[%s2011_s17 + $0x50] sm:$0xff]  ;;  %v274_v12 = vld [vmem:[%s2003_s9] sm:$0xff]  ;;  %s1134_s16 = scalar_lea.sflag [#allocation4], %s1996_s10  ;;  %s1704_s26 = scalar_lea.vmem %s2403_s11, 3072 }
  0x75   : > { %v335_v8 = vpack.c.bf16 %v313_v6, %v312_v5  ;;  %v321_v10 = vld [vmem:[%s2011_s17 + $0x58] sm:$0xff]  ;;  %1350 = vmatprep.subr.bf16.mxu0 %v334_v3  ;;  %v275_v13 = vld [vmem:[%s2003_s9 + $0x8] sm:$0xff]  ;;  %v314_v14 = vld [vmem:[%s2011_s17 + $0x20] sm:$0xff]  ;;  %s2401_s5 = scalar_lea.hbm %s2453_s3, %s1301_s4  ;;  %p1705_p13 = scmp.ne.s32.totalorder %s2403_s11, %s1704_s26 }
  0x76   : > { %v339_v11 = vpack.c.bf16 %v321_v10, %v320_v9  ;;  %1351 = vmatpush3.bf16.xpose.msra.mxu0 %v334_v3  ;;  %1366 = vmatprep.subr.bf16.mxu1 %v338_v7  ;;  %v315_v15 = vld [vmem:[%s2011_s17 + $0x28] sm:$0xff]  ;;  %v298_v16 = vpack.c.bf16 %v275_v13, %v274_v12  ;;  %v282_v17 = vld [vmem:[%s2003_s9 + $0x40] sm:$0xff]  ;;  %v316_v24 = vld [vmem:[%s2011_s17 + $0x30] sm:$0xff]  ;;  %p2473_p7 = scmp.ne.s32.totalorder %s2462_s23, 0  ;;  %s1781_s27 = smov [#allocation8]  }
  0x77   : > { %1367 = vmatpush3.bf16.xpose.msra.mxu1 %v338_v7  ;;  %1352 = vmatprep.subr.bf16.mxu0 %v335_v8  ;;  %v322_v18 = vld [vmem:[%s2011_s17 + $0x60] sm:$0xff]  ;;  %v323_v19 = vld [vmem:[%s2011_s17 + $0x68] sm:$0xff]  ;;  %v336_v22 = vpack.c.bf16 %v315_v15, %v314_v14  ;;  %v317_v25 = vld [vmem:[%s2011_s17 + $0x38] sm:$0xff]  ;;  %s1708_s0 = sshll.u32 %s1781_s27, 4  ;;  %s1709_s0 = int_to_ptr.vmem [resolvable:$false] %s1708_s0 }
  0x78   : > { %1368 = vmatprep.subr.bf16.mxu1 %v339_v11  ;;  %v283_v20 = vld [vmem:[%s2003_s9 + $0x48] sm:$0xff]  ;;  %1358 = vmatprep.mubr.bf16.mxu0 %v298_v16  ;;  %v340_v23 = vpack.c.bf16 %v323_v19, %v322_v18  ;;  %v324_v26 = vld [vmem:[%s2011_s17 + $0x70] sm:$0xff]  ;;  %v325_v27 = vld [vmem:[%s2011_s17 + $0x78] sm:$0xff]  ;;  %v337_v28 = vpack.c.bf16 %v317_v25, %v316_v24  ;;  %p1706_p6 = pnand %p1705_p13, %p2473_p7  ;;  %s1710_s19 = scalar_lea.vmem %s1709_s0, 6144 }
  0x79   : > { %v302_v21 = vpack.c.bf16 %v283_v20, %v282_v17  ;;  %v341_v29 = vpack.c.bf16 %v325_v27, %v324_v26  ;;  %v326_v30 = vld [vmem:[%s2011_s17 + $0x80] sm:$0xff]  ;;  %v327_v31 = vld [vmem:[%s2011_s17 + $0x88] sm:$0xff]  ;;  %v276_v33 = vld [vmem:[%s2003_s9 + $0x10] sm:$0xff]  ;;  %p1711_p12 = scmp.lt.s32.totalorder %s2403_s11, %s1709_s0  ;;  %p1712_p0 = scmp.lt.s32.totalorder %s1710_s19, %s1704_s26 }
  0x7a   : > { %v342_v32 = vpack.c.bf16 %v327_v31, %v326_v30  ;;  %v277_v34 = vld [vmem:[%s2003_s9 + $0x18] sm:$0xff]  ;;  %v284_v35 = vld [vmem:[%s2003_s9 + $0x50] sm:$0xff]  ;;  %v278_v39 = vld [vmem:[%s2003_s9 + $0x20] sm:$0xff]  ;;  %p1707_p9 = pneg %p1706_p6 }
  0x7b   : > { %1374 = vmatprep.mubr.bf16.mxu1 %v302_v21  ;;  %v285_v36 = vld [vmem:[%s2003_s9 + $0x58] sm:$0xff]  ;;  %v328_v37 = vld [vmem:[%s2011_s17 + $0x90] sm:$0xff]  ;;  %v279_v40 = vld [vmem:[%s2003_s9 + $0x28] sm:$0xff]  ;;  %v299_v41 = vpack.c.bf16 %v277_v34, %v276_v33  ;;  %p1713_p8 = por %p1712_p0, %p1711_p12 }
  0x7c   : > { %v329_v38 = vld [vmem:[%s2011_s17 + $0x98] sm:$0xff]  ;;  %v286_v42 = vld [vmem:[%s2003_s9 + $0x60] sm:$0xff]  ;;  %v287_v43 = vld [vmem:[%s2003_s9 + $0x68] sm:$0xff]  ;;  %v303_v44 = vpack.c.bf16 %v285_v36, %v284_v35  ;;  %v300_v46 = vpack.c.bf16 %v279_v40, %v278_v39 }
  0x7d   : > { %v343_v45 = vpack.c.bf16 %v329_v38, %v328_v37  ;;  %v304_v47 = vpack.c.bf16 %v287_v43, %v286_v42  ;;  %v280_v48 = vld [vmem:[%s2003_s9 + $0x30] sm:$0xff]  ;;  %v281_v49 = vld [vmem:[%s2003_s9 + $0x38] sm:$0xff]  ;;  %v330_v50 = vld [vmem:[%s2011_s17 + $0xa0] sm:$0xff]  ;;  %p1714_p10 = pnand %p1713_p8, %p1707_p9 }
  0x7e   : > { %1353 = vmatpush3.bf16.xpose.msra.mxu0 %v335_v8  ;;  %v288_v51 = vld [vmem:[%s2003_s9 + $0x70] sm:$0xff]  ;;  %v289_v52 = vld [vmem:[%s2003_s9 + $0x78] sm:$0xff]  ;;  %v331_v53 = vld [vmem:[%s2011_s17 + $0xa8] sm:$0xff]  ;;  %v301_v56 = vpack.c.bf16 %v281_v49, %v280_v48 }
  0x7f   : > { %1369 = vmatpush3.bf16.xpose.msra.mxu1 %v339_v11  ;;  %1354 = vmatprep.subr.bf16.mxu0 %v336_v22  ;;  %v290_v54 = vld [vmem:[%s2003_s9 + $0x80] sm:$0xff]  ;;  %v291_v55 = vld [vmem:[%s2003_s9 + $0x88] sm:$0xff]  ;;  %v305_v57 = vpack.c.bf16 %v289_v52, %v288_v51  ;;  %v344_v58 = vpack.c.bf16 %v331_v53, %v330_v50  ;;  %v332_v60 = vld [vmem:[%s2011_s17 + $0xb0] sm:$0xff] }
  0x80   : > { %1370 = vmatprep.subr.bf16.mxu1 %v340_v23  ;;  %v306_v59 = vpack.c.bf16 %v291_v55, %v290_v54  ;;  %v333_v61 = vld [vmem:[%s2011_s17 + $0xb8] sm:$0xff]  ;;  %v292_v63 = vld [vmem:[%s2003_s9 + $0x90] sm:$0xff]  ;;  %v294_v1 = vld [vmem:[%s2003_s9 + $0xa0] sm:$0xff] }
  0x81   : > { %v345_v62 = vpack.c.bf16 %v333_v61, %v332_v60  ;;  %v293_v0 = vld [vmem:[%s2003_s9 + $0x98] sm:$0xff]  ;;  %v295_v2 = vld [vmem:[%s2003_s9 + $0xa8] sm:$0xff]  ;;  %v296_v5 = vld [vmem:[%s2003_s9 + $0xb0] sm:$0xff] }
  0x82   : > { %v307_v3 = vpack.c.bf16 %v293_v0, %v292_v63  ;;  %v308_v4 = vpack.c.bf16 %v295_v2, %v294_v1  ;;  %v297_v6 = vld [vmem:[%s2003_s9 + $0xb8] sm:$0xff] }
  0x83   : > { %v309_v7 = vpack.c.bf16 %v297_v6, %v296_v5 }
  0x86   : > { %1355 = vmatpush3.bf16.xpose.msra.mxu0 %v336_v22 }
  0x87   : > { %1371 = vmatpush3.bf16.xpose.msra.mxu1 %v340_v23  ;;  %1356 = vmatprep.subr.bf16.mxu0 %v337_v28 }
  0x88   : > { %1372 = vmatprep.subr.bf16.mxu1 %v341_v29 }
  0x8e   : > { %1357 = vmatpush3.bf16.xpose.msra.mxu0 %v337_v28 }
  0x8f   : > { %1373 = vmatpush3.bf16.xpose.msra.mxu1 %v341_v29  ;;  %1382 = vmatprep.subr.bf16.mxu0 %v342_v32 }
  0x95   : > { %1359 = vmatmul.mubr.bf16.vlgmr.msra.gmra.mrb[0].mxu0 %v299_v41 }
  0x96   : > { %1375 = vmatmul.mubr.bf16.vlgmr.msra.gmra.mrb[0].mxu1 %v303_v44  ;;  %1383 = vmatpush3.bf16.xpose.msra.mxu0 %v342_v32 }
  0x97   : > { %1384 = vmatprep.subr.bf16.mxu0 %v343_v45  ;;  %1362 = vmatprep.mubr.bf16.mxu0 %v300_v46 }
  0x98   : > { %1378 = vmatprep.mubr.bf16.mxu1 %v304_v47 }
  0x9d   : > { %1363 = vmatmul.mubr.bf16.gmra.mrb[4].mxu0 %v301_v56 }
  0x9e   : > { %1385 = vmatpush3.bf16.xpose.msra.mxu0 %v343_v45  ;;  %1379 = vmatmul.mubr.bf16.gmra.mrb[4].mxu1 %v305_v57 }
  0x9f   : > { %1386 = vmatprep.subr.bf16.mxu0 %v344_v58  ;;  %1390 = vmatprep.mubr.bf16.mxu0 %v306_v59 }
  0xa6   : > { %1387 = vmatpush3.bf16.xpose.msra.mxu0 %v344_v58 }
  0xa7   : > { %1388 = vmatprep.subr.bf16.mxu0 %v345_v62 }
  0xae   : > { %1389 = vmatpush3.bf16.xpose.msra.mxu0 %v345_v62 }
  0xb5   : > { %1391 = vmatmul.mubr.bf16.vlgmr.msra.gmra.mrb[8].mxu0 %v307_v3 }
  0xb6   : > { %1394 = vmatprep.mubr.bf16.mxu0 %v308_v4 }
  0xbd   : > { %1395 = vmatmul.mubr.bf16.gmra.mrb[12].mxu0 %v309_v7 }
 0x168   : > { %v1360_v8 = vpop.f32.mrb[0].mxu0 }
 0x169   : > { %v2065_v9 = vmul.f32 0.088388346, %v1360_v8  ;;  %v380_v10 = vpop.f32.mrb[1].mxu0  ;;  %v1376_v11 = vpop.f32.mrb[0].mxu1 }
 0x16a   : > { %v2067_v12 = vmul.f32 0.088388346, %v380_v10  ;;  %v1361_v13 = vpop.f32.mrb[2].mxu0  ;;  %v445_v14 = vpop.f32.mrb[1].mxu1  ;;  %v2105_v44 = vmul.f32 0.088388346, %v1376_v11 }
 0x16b   : > { %v2069_v15 = vmul.f32 0.088388346, %v445_v14  ;;  %v383_v16 = vpop.f32.mrb[3].mxu0  ;;  %v1377_v17 = vpop.f32.mrb[2].mxu1  ;;  %v2071_v18 = vmul.f32 0.088388346, %v1361_v13 }
 0x16c   : > { %v448_v19 = vpop.f32.mrb[3].mxu1  ;;  %v572_v20 = vsel %vm565_vm0, %v2065_v9, -inf  ;;  %v566_v21 = vsel %vm565_vm0, %v2067_v12, -inf  ;;  %v2083_v26 = vmul.f32 0.088388346, %v383_v16  ;;  %v596_v49 = vsel %vm565_vm0, %v2105_v44, -inf }
 0x16d   : > { %573 = vmax.xlane.f32.xlu1 %v572_v20  ;;  %567 = vmax.xlane.f32.xlu0 %v566_v21  ;;  %v590_v22 = vsel %vm565_vm0, %v2069_v15, -inf  ;;  %v2079_v23 = vmul.f32 0.088388346, %v448_v19  ;;  %v575_v24 = vsel %vm565_vm0, %v2071_v18, -inf  ;;  %v2103_v43 = vmul.f32 0.088388346, %v1377_v17 }
 0x16e   : > { %v569_v36 = vsel %vm565_vm0, %v2083_v26, -inf }
 0x16f   : > { %v593_v34 = vsel %vm565_vm0, %v2079_v23, -inf  ;;  %v599_v48 = vsel %vm565_vm0, %v2103_v43, -inf }
 0x170   : > { %v1364_v25 = vpop.f32.mrb[4].mxu0 }
 0x171   : > { %576 = vmax.xlane.f32.xlu1 %v575_v24  ;;  %v396_v27 = vpop.f32.mrb[5].mxu0  ;;  %v1380_v28 = vpop.f32.mrb[4].mxu1  ;;  %591 = vmax.xlane.f32.xlu0 %v590_v22  ;;  %v2085_v31 = vmul.f32 0.088388346, %v1364_v25 }
 0x172   : > { %v1365_v29 = vpop.f32.mrb[6].mxu0  ;;  %v461_v30 = vpop.f32.mrb[5].mxu1  ;;  %v2099_v41 = vmul.f32 0.088388346, %v396_v27  ;;  %v2123_v53 = vmul.f32 0.088388346, %v1380_v28 }
 0x173   : > { %v2087_v32 = vmul.f32 0.088388346, %v1365_v29  ;;  %v399_v33 = vpop.f32.mrb[7].mxu0  ;;  %v1381_v35 = vpop.f32.mrb[6].mxu1  ;;  %v584_v40 = vsel %vm565_vm0, %v2085_v31, -inf }
 0x174   : > { %v464_v37 = vpop.f32.mrb[7].mxu1  ;;  %v2093_v38 = vmul.f32 0.088388346, %v399_v33  ;;  %v578_v45 = vsel %vm565_vm0, %v2099_v41, -inf  ;;  %v2109_v46 = vmul.f32 0.088388346, %v1381_v35 }
 0x175   : > { %594 = vmax.xlane.f32.xlu1 %v593_v34  ;;  %570 = vmax.xlane.f32.xlu0 %v569_v36  ;;  %v587_v39 = vsel %vm565_vm0, %v2087_v32, -inf  ;;  %v2111_v47 = vmul.f32 0.088388346, %v461_v30  ;;  %v2117_v50 = vmul.f32 0.088388346, %v464_v37  ;;  %v608_v57 = vsel %vm565_vm0, %v2123_v53, -inf }
 0x176   : > { %v581_v42 = vsel %vm565_vm0, %v2093_v38, -inf  ;;  %v611_v51 = vsel %vm565_vm0, %v2109_v46, -inf }
 0x177   : > { %v602_v52 = vsel %vm565_vm0, %v2111_v47, -inf  ;;  %v605_v54 = vsel %vm565_vm0, %v2117_v50, -inf }
 0x179   : > { %588 = vmax.xlane.f32.xlu1 %v587_v39  ;;  %585 = vmax.xlane.f32.xlu0 %v584_v40 }
 0x17d   : > { %582 = vmax.xlane.f32.xlu1 %v581_v42  ;;  %579 = vmax.xlane.f32.xlu0 %v578_v45 }
 0x181   : > { %600 = vmax.xlane.f32.xlu1 %v599_v48  ;;  %597 = vmax.xlane.f32.xlu0 %v596_v49 }
 0x185   : > { %612 = vmax.xlane.f32.xlu1 %v611_v51  ;;  %603 = vmax.xlane.f32.xlu0 %v602_v52 }
 0x188   : > { %v1392_v55 = vpop.f32.mrb[8].mxu0 }
 0x189   : > { %606 = vmax.xlane.f32.xlu1 %v605_v54  ;;  %v2127_v56 = vmul.f32 0.088388346, %v1392_v55  ;;  %v510_v58 = vpop.f32.mrb[9].mxu0  ;;  %609 = vmax.xlane.f32.xlu0 %v608_v57 }
 0x18a   : > { %v1393_v59 = vpop.f32.mrb[10].mxu0  ;;  %v2135_v63 = vmul.f32 0.088388346, %v510_v58 }
 0x18b   : > { %v2131_v60 = vmul.f32 0.088388346, %v1393_v59  ;;  %v513_v61 = vpop.f32.mrb[11].mxu0  ;;  %v620_v62 = vsel %vm565_vm0, %v2127_v56, -inf }
 0x18c   : > { %v2137_v0 = vmul.f32 0.088388346, %v513_v61  ;;  %v614_v3 = vsel %vm565_vm0, %v2135_v63, -inf }
 0x18d   : > { %v623_v1 = vsel %vm565_vm0, %v2131_v60, -inf  ;;  %621 = vmax.xlane.f32.xlu0 %v620_v62 }
 0x18e   : > { %624 = vmax.xlane.f32.xlu1 %v623_v1  ;;  %v617_v5 = vsel %vm565_vm0, %v2137_v0, -inf }
 0x190   : > { %v1396_v2 = vpop.f32.mrb[12].mxu0 }
 0x191   : > { %v526_v4 = vpop.f32.mrb[13].mxu0  ;;  %615 = vmax.xlane.f32.xlu0 %v614_v3  ;;  %v2151_v13 = vmul.f32 0.088388346, %v1396_v2 }
 0x192   : > { %v2145_v6 = vmul.f32 0.088388346, %v526_v4  ;;  %618 = vmax.xlane.f32.xlu1 %v617_v5  ;;  %v1397_v7 = vpop.f32.mrb[14].mxu0 }
 0x193   : > { %v529_v8 = vpop.f32.mrb[15].mxu0  ;;  %v2153_v14 = vmul.f32 0.088388346, %v1397_v7  ;;  %v632_v17 = vsel %vm565_vm0, %v2151_v13, -inf }
 0x194   : > { %v2147_v10 = vmul.f32 0.088388346, %v529_v8  ;;  %v626_v11 = vsel %vm565_vm0, %v2145_v6, -inf }
 0x195   : > { %627 = vmax.xlane.f32.xlu0 %v626_v11  ;;  %v635_v19 = vsel %vm565_vm0, %v2153_v14, -inf }
 0x196   : > { %v629_v16 = vsel %vm565_vm0, %v2147_v10, -inf }
 0x197   : > { %630 = vmax.xlane.f32.xlu1 %v629_v16 }
 0x199   : > { %633 = vmax.xlane.f32.xlu0 %v632_v17 }
 0x19b   : > { %636 = vmax.xlane.f32.xlu1 %v635_v19 }
 0x1fa   : > { %v574_v20 = vpop.xlane.xlu1 %573  ;;  %v568_v22 = vpop.xlane.xlu0 %567 }
 0x1fb   : > { %v640_v21 = vsub.f32 %v2065_v9, %v574_v20  ;;  %v638_v24 = vsub.f32 %v2067_v12, %v568_v22 }
 0x1fd   : > { %v666_v25 = vmul.f32 1.442695, %v640_v21  ;;  %v662_v27 = vmul.f32 1.442695, %v638_v24 }
 0x1fe   : > { %v577_v28 = vpop.xlane.xlu1 %576  ;;  %v592_v30 = vpop.xlane.xlu0 %591 }
 0x1ff   : > { %1518 = vpow2.f32 %v666_v25  ;;  %v641_v29 = vsub.f32 %v2071_v18, %v577_v28  ;;  %v646_v33 = vsub.f32 %v2069_v15, %v592_v30 }
 0x200   : > { %1520 = vpow2.f32 %v662_v27 }
 0x201   : > { %v668_v34 = vmul.f32 1.442695, %v641_v29  ;;  %v678_v35 = vmul.f32 1.442695, %v646_v33 }
 0x202   : > { %v595_v36 = vpop.xlane.xlu1 %594  ;;  %v571_v9 = vpop.xlane.xlu0 %570 }
 0x203   : > { %1522 = vpow2.f32 %v668_v34  ;;  %v647_v37 = vsub.f32 %v2079_v23, %v595_v36  ;;  %v639_v39 = vsub.f32 %v2083_v26, %v571_v9 }
 0x204   : > { %1524 = vpow2.f32 %v678_v35 }
 0x205   : > { %v680_v12 = vmul.f32 1.442695, %v647_v37  ;;  %v664_v40 = vmul.f32 1.442695, %v639_v39 }
 0x206   : > { %v589_v42 = vpop.xlane.xlu1 %588  ;;  %v586_v18 = vpop.xlane.xlu0 %585 }
 0x207   : > { %v645_v45 = vsub.f32 %v2087_v32, %v589_v42  ;;  %1526 = vpow2.f32 %v664_v40  ;;  %v644_v15 = vsub.f32 %v2085_v31, %v586_v18 }
 0x208   : > { %1528 = vpow2.f32 %v680_v12 }
 0x209   : > { %v2169_v48 = vpop.eup %1518  ;;  %v676_v49 = vmul.f32 1.442695, %v645_v45  ;;  %v674_v51 = vmul.f32 1.442695, %v644_v15 }
 0x20a   : > { %v583_v52 = vpop.xlane.xlu1 %582  ;;  %v716_v23 = vsel %vm565_vm0, %v2169_v48, 0.0  ;;  %v2173_v26 = vpop.eup %1520 }
 0x20b   : > { %v643_v54 = vsub.f32 %v2093_v38, %v583_v52  ;;  %v580_v55 = vpop.xlane.xlu0 %579  ;;  %717 = vadd.xlane.f32.xlu0 %v716_v23  ;;  %1530 = vpow2.f32 %v674_v51  ;;  %v710_v61 = vsel %vm565_vm0, %v2173_v26, 0.0  ;;  %v842_v51 = vld [vmem:[%s2228_s22] sm:$0xff]  ;;  %v843_v52 = vld [vmem:[%s2228_s22 + $0x8] sm:$0xff] }
 0x20c   : > { %v642_v32 = vsub.f32 %v2099_v41, %v580_v55  ;;  %1532 = vpow2.f32 %v676_v49  ;;  %v866_v23 = vpack.c.bf16 %v843_v52, %v842_v51 }
 0x20d   : > { %v2177_v57 = vpop.eup %1522  ;;  %v672_v31 = vmul.f32 1.442695, %v643_v54 }
 0x20e   : > { %v670_v58 = vmul.f32 1.442695, %v642_v32  ;;  %v601_v59 = vpop.xlane.xlu1 %600  ;;  %v719_v62 = vsel %vm565_vm0, %v2177_v57, 0.0  ;;  %v2183_v1 = vpop.eup %1524  ;;  %1398 = vmatprep.subr.bf16.mxu1 %v866_v23 }
 0x20f   : > { %v649_v38 = vsub.f32 %v2103_v43, %v601_v59  ;;  %v598_v2 = vpop.xlane.xlu0 %597  ;;  %711 = vadd.xlane.f32.xlu0 %v710_v61  ;;  %720 = vadd.xlane.f32.xlu1 %v719_v62  ;;  %v734_v8 = vsel %vm565_vm0, %v2183_v1, 0.0  ;;  %v844_v62 = vld [vmem:[%s2228_s22 + $0x10] sm:$0xff] }
 0x210   : > { %1534 = vpow2.f32 %v670_v58  ;;  %v648_v41 = vsub.f32 %v2105_v44, %v598_v2  ;;  %1399 = vmatpush3.bf16.msra.mxu1 %v866_v23  ;;  %v858_v23 = vld [vmem:[%s2228_s22 + $0x80] sm:$0xff] }
 0x211   : > { %v2187_v3 = vpop.eup %1526  ;;  %1536 = vpow2.f32 %v672_v31  ;;  %v684_v4 = vmul.f32 1.442695, %v649_v38  ;;  %v845_v38 = vld [vmem:[%s2228_s22 + $0x18] sm:$0xff] }
 0x212   : > { %v682_v5 = vmul.f32 1.442695, %v648_v41  ;;  %v613_v7 = vpop.xlane.xlu1 %612  ;;  %v713_v43 = vsel %vm565_vm0, %v2187_v3, 0.0  ;;  %v2194_v17 = vpop.eup %1528  ;;  %v867_v41 = vpack.c.bf16 %v845_v38, %v844_v62  ;;  %v864_v38 = vld [vmem:[%s2228_s22 + $0xb0] sm:$0xff] }
 0x213   : > { %v653_v11 = vsub.f32 %v2109_v46, %v613_v7  ;;  %v604_v16 = vpop.xlane.xlu0 %603  ;;  %735 = vadd.xlane.f32.xlu0 %v734_v8  ;;  %714 = vadd.xlane.f32.xlu1 %v713_v43  ;;  %v737_v28 = vsel %vm565_vm0, %v2194_v17, 0.0 }
 0x214   : > { %1538 = vpow2.f32 %v682_v5  ;;  %v650_v44 = vsub.f32 %v2111_v47, %v604_v16  ;;  %1400 = vmatprep.subr.bf16.mxu1 %v867_v41 }
 0x215   : > { %v2197_v19 = vpop.eup %1530  ;;  %1540 = vpow2.f32 %v684_v4  ;;  %v692_v20 = vmul.f32 1.442695, %v653_v11  ;;  %1401 = vmatpush3.bf16.msra.mxu1 %v867_v41 }
 0x216   : > { %v686_v21 = vmul.f32 1.442695, %v650_v44  ;;  %v607_v22 = vpop.xlane.xlu1 %606  ;;  %v2199_v24 = vpop.eup %1532  ;;  %v728_v27 = vsel %vm565_vm0, %v2197_v19, 0.0  ;;  %v846_v44 = vld [vmem:[%s2228_s22 + $0x20] sm:$0xff] }
 0x217   : > { %v651_v46 = vsub.f32 %v2117_v50, %v607_v22  ;;  %v610_v25 = vpop.xlane.xlu0 %609  ;;  %729 = vadd.xlane.f32.xlu0 %v728_v27  ;;  %738 = vadd.xlane.f32.xlu1 %v737_v28  ;;  %v731_v36 = vsel %vm565_vm0, %v2199_v24, 0.0 }
 0x218   : > { %1542 = vpow2.f32 %v686_v21  ;;  %v652_v47 = vsub.f32 %v2123_v53, %v610_v25 }
 0x219   : > { %1544 = vpow2.f32 %v692_v20  ;;  %v688_v30 = vmul.f32 1.442695, %v651_v46  ;;  %v847_v20 = vld [vmem:[%s2228_s22 + $0x28] sm:$0xff] }
 0x21a   : > { %v2207_v29 = vpop.eup %1534  ;;  %v690_v33 = vmul.f32 1.442695, %v652_v47  ;;  %v868_v22 = vpack.c.bf16 %v847_v20, %v846_v44 }
 0x21b   : > { %v622_v34 = vpop.xlane.xlu0 %621  ;;  %v625_v35 = vpop.xlane.xlu1 %624  ;;  %v722_v50 = vsel %vm565_vm0, %v2207_v29, 0.0  ;;  %732 = vadd.xlane.f32.xlu1 %v731_v36 }
 0x21c   : > { %v2213_v37 = vpop.eup %1536  ;;  %1546 = vpow2.f32 %v690_v33  ;;  %v656_v53 = vsub.f32 %v2127_v56, %v622_v34  ;;  %v657_v9 = vsub.f32 %v2131_v60, %v625_v35  ;;  %723 = vadd.xlane.f32.xlu0 %v722_v50  ;;  %1402 = vmatprep.subr.bf16.mxu1 %v868_v22 }
 0x21d   : > { %1548 = vpow2.f32 %v688_v30  ;;  %v725_v15 = vsel %vm565_vm0, %v2213_v37, 0.0  ;;  %v849_v30 = vld [vmem:[%s2228_s22 + $0x38] sm:$0xff]  ;;  %1403 = vmatpush3.bf16.msra.mxu1 %v868_v22 }
 0x21e   : > { %v2217_v39 = vpop.eup %1538  ;;  %v698_v12 = vmul.f32 1.442695, %v656_v53  ;;  %v700_v40 = vmul.f32 1.442695, %v657_v9 }
 0x21f   : > { %v616_v42 = vpop.xlane.xlu0 %615  ;;  %v619_v45 = vpop.xlane.xlu1 %618  ;;  %v740_v18 = vsel %vm565_vm0, %v2217_v39, 0.0  ;;  %726 = vadd.xlane.f32.xlu1 %v725_v15 }
 0x220   : > { %v2223_v49 = vpop.eup %1540  ;;  %1550 = vpow2.f32 %v698_v12  ;;  %v654_v56 = vsub.f32 %v2135_v63, %v616_v42  ;;  %v655_v60 = vsub.f32 %v2137_v0, %v619_v45  ;;  %741 = vadd.xlane.f32.xlu0 %v740_v18  ;;  %v850_v42 = vld [vmem:[%s2228_s22 + $0x40] sm:$0xff]  ;;  %v851_v45 = vld [vmem:[%s2228_s22 + $0x48] sm:$0xff] }
 0x221   : > { %1552 = vpow2.f32 %v700_v40  ;;  %v743_v0 = vsel %vm565_vm0, %v2223_v49, 0.0  ;;  %v2284_v18 = vpack.c.bf16 %v851_v45, %v850_v42 }
 0x222   : > { %v2232_v54 = vpop.eup %1542  ;;  %v694_v55 = vmul.f32 1.442695, %v654_v56  ;;  %v696_v32 = vmul.f32 1.442695, %v655_v60 }
 0x223   : > { %v628_v31 = vpop.xlane.xlu0 %627  ;;  %v746_v63 = vsel %vm565_vm0, %v2232_v54, 0.0  ;;  %v2238_v58 = vpop.eup %1544  ;;  %744 = vadd.xlane.f32.xlu1 %v743_v0 }
 0x224   : > { %1554 = vpow2.f32 %v694_v55  ;;  %v658_v59 = vsub.f32 %v2145_v6, %v628_v31  ;;  %747 = vadd.xlane.f32.xlu0 %v746_v63  ;;  %v631_v61 = vpop.xlane.xlu1 %630  ;;  %v755_v11 = vsel %vm565_vm0, %v2238_v58, 0.0  ;;  %v859_v55 = vld [vmem:[%s2228_s22 + $0x88] sm:$0xff]  ;;  %v860_v31 = vld [vmem:[%s2228_s22 + $0x90] sm:$0xff]  ;;  %v861_v63 = vld [vmem:[%s2228_s22 + $0x98] sm:$0xff] }
 0x225   : > { %v659_v2 = vsub.f32 %v2147_v10, %v631_v61  ;;  %1556 = vpow2.f32 %v696_v32  ;;  %v2299_v32 = vpack.c.bf16 %v859_v55, %v858_v23  ;;  %v2305_v0 = vpack.c.bf16 %v861_v63, %v860_v31  ;;  %v863_v61 = vld [vmem:[%s2228_s22 + $0xa8] sm:$0xff]  ;;  %v856_v31 = vld [vmem:[%s2228_s22 + $0x70] sm:$0xff]  ;;  %v857_v63 = vld [vmem:[%s2228_s22 + $0x78] sm:$0xff] }
 0x226   : > { %v2244_v4 = vpop.eup %1546  ;;  %v702_v5 = vmul.f32 1.442695, %v658_v59  ;;  %v862_v59 = vld [vmem:[%s2228_s22 + $0xa0] sm:$0xff] }
 0x227   : > { %v704_v7 = vmul.f32 1.442695, %v659_v2  ;;  %v634_v8 = vpop.xlane.xlu0 %633  ;;  %v752_v6 = vsel %vm565_vm0, %v2244_v4, 0.0  ;;  %v2250_v16 = vpop.eup %1548  ;;  %756 = vadd.xlane.f32.xlu1 %v755_v11  ;;  %1430 = vmatprep.subr.bf16.mxu0 %v2299_v32  ;;  %v2311_v62 = vpack.c.bf16 %v863_v61, %v862_v59  ;;  %v865_v2 = vld [vmem:[%s2228_s22 + $0xb8] sm:$0xff] }
 0x228   : > { %1558 = vpow2.f32 %v702_v5  ;;  %v660_v10 = vsub.f32 %v2151_v13, %v634_v8  ;;  %753 = vadd.xlane.f32.xlu0 %v752_v6  ;;  %v637_v43 = vpop.xlane.xlu1 %636  ;;  %v749_v13 = vsel %vm565_vm0, %v2250_v16, 0.0  ;;  %1431 = vmatpush3.bf16.msra.mxu0 %v2299_v32  ;;  %v2317_v41 = vpack.c.bf16 %v865_v2, %v864_v38 }
 0x229   : > { %v661_v21 = vsub.f32 %v2153_v14, %v637_v43  ;;  %1560 = vpow2.f32 %v704_v7  ;;  %v848_v14 = vld [vmem:[%s2228_s22 + $0x30] sm:$0xff]  ;;  %1432 = vmatprep.subr.bf16.mxu0 %v2305_v0  ;;  %v873_v2 = vpack.c.bf16 %v857_v63, %v856_v31 }
 0x22a   : > { %v2256_v46 = vpop.eup %1550  ;;  %v706_v25 = vmul.f32 1.442695, %v660_v10  ;;  %v869_v33 = vpack.c.bf16 %v849_v30, %v848_v14 }
 0x22b   : > { %v708_v27 = vmul.f32 1.442695, %v661_v21  ;;  %v764_v28 = vsel %vm565_vm0, %v2256_v46, 0.0  ;;  %v2262_v47 = vpop.eup %1552  ;;  %750 = vadd.xlane.f32.xlu1 %v749_v13 }
 0x22c   : > { %1562 = vpow2.f32 %v706_v25  ;;  %765 = vadd.xlane.f32.xlu0 %v764_v28  ;;  %v767_v50 = vsel %vm565_vm0, %v2262_v47, 0.0  ;;  %1404 = vmatprep.subr.bf16.mxu1 %v869_v33 }
 0x22d   : > { %1564 = vpow2.f32 %v708_v27  ;;  %1405 = vmatpush3.bf16.msra.mxu1 %v869_v33  ;;  %1433 = vmatpush3.bf16.msra.mxu0 %v2305_v0 }
 0x22e   : > { %v2266_v34 = vpop.eup %1554  ;;  %1414 = vmatprep.subr.bf16.mxu1 %v2284_v18  ;;  %1434 = vmatprep.subr.bf16.mxu0 %v2311_v62 }
 0x22f   : > { %v758_v35 = vsel %vm565_vm0, %v2266_v34, 0.0  ;;  %v2272_v36 = vpop.eup %1556  ;;  %768 = vadd.xlane.f32.xlu1 %v767_v50  ;;  %v853_v50 = vld [vmem:[%s2228_s22 + $0x58] sm:$0xff] }
 0x230   : > { %759 = vadd.xlane.f32.xlu0 %v758_v35  ;;  %v761_v12 = vsel %vm565_vm0, %v2272_v36, 0.0  ;;  %v852_v35 = vld [vmem:[%s2228_s22 + $0x50] sm:$0xff] }
 0x231   : > { %1435 = vmatpush3.bf16.msra.mxu0 %v2311_v62 }
 0x232   : > { %v2274_v53 = vpop.eup %1558  ;;  %1436 = vmatprep.subr.bf16.mxu0 %v2317_v41 }
 0x233   : > { %v770_v9 = vsel %vm565_vm0, %v2274_v53, 0.0  ;;  %v2280_v40 = vpop.eup %1560  ;;  %762 = vadd.xlane.f32.xlu1 %v761_v12 }
 0x234   : > { %771 = vadd.xlane.f32.xlu0 %v770_v9  ;;  %v773_v60 = vsel %vm565_vm0, %v2280_v40, 0.0 }
 0x235   : > { %1437 = vmatpush3.bf16.msra.mxu0 %v2317_v41 }
 0x236   : > { %v2286_v15 = vpop.eup %1562 }
 0x237   : > { %v776_v56 = vsel %vm565_vm0, %v2286_v15, 0.0  ;;  %v2293_v51 = vpop.eup %1564  ;;  %774 = vadd.xlane.f32.xlu1 %v773_v60  ;;  %v854_v60 = vld [vmem:[%s2228_s22 + $0x60] sm:$0xff] }
 0x238   : > { %777 = vadd.xlane.f32.xlu0 %v776_v56  ;;  %v779_v52 = vsel %vm565_vm0, %v2293_v51, 0.0 }
 0x23b   : > { %780 = vadd.xlane.f32.xlu1 %v779_v52  ;;  %v855_v52 = vld [vmem:[%s2228_s22 + $0x68] sm:$0xff] }
 0x298   : > { %v718_v5 = vpop.xlane.xlu0 %717 }
 0x29c   : > { %v712_v7 = vpop.xlane.xlu0 %711  ;;  %v721_v8 = vpop.xlane.xlu1 %720 }
 0x29d   : > { %1566 = vrcp.f32 %v721_v8 }
 0x29e   : > { %1568 = vrcp.f32 %v712_v7 }
 0x29f   : > { %1570 = vrcp.f32 %v718_v5 }
 0x2a0   : > { %v736_v6 = vpop.xlane.xlu0 %735  ;;  %v715_v11 = vpop.xlane.xlu1 %714 }
 0x2a1   : > { %1572 = vrcp.f32 %v715_v11 }
 0x2a2   : > { %1574 = vrcp.f32 %v736_v6 }
 0x2a4   : > { %v730_v10 = vpop.xlane.xlu0 %729  ;;  %v739_v43 = vpop.xlane.xlu1 %738 }
 0x2a5   : > { %1576 = vrcp.f32 %v739_v43 }
 0x2a7   : > { %v1567_v44 = vpop.eup %1566 }
 0x2a8   : > { %v733_v21 = vpop.xlane.xlu1 %732  ;;  %v1569_v22 = vpop.eup %1568  ;;  %v789_v28 = vmul.f32 %v1567_v44, %v2177_v57  ;;  %v871_v57 = vpack.c.bf16 %v853_v50, %v852_v35 }
 0x2a9   : > { %v724_v20 = vpop.xlane.xlu0 %723  ;;  %v1571_v25 = vpop.eup %1570  ;;  %1578 = vrcp.f32 %v733_v21  ;;  %v783_v30 = vmul.f32 %v1569_v22, %v2173_v26 }
 0x2aa   : > { %1580 = vrcp.f32 %v724_v20  ;;  %v787_v9 = vmul.f32 %v1571_v25, %v2169_v48  ;;  %v872_v48 = vpack.c.bf16 %v855_v52, %v854_v60 }
 0x2ab   : > { %v1573_v27 = vpop.eup %1572  ;;  %1582 = vrcp.f32 %v730_v10 }
 0x2ac   : > { %v727_v14 = vpop.xlane.xlu1 %726  ;;  %v785_v33 = vmul.f32 %v1573_v27, %v2187_v3  ;;  %v831_v42 = vpack.c.bf16 %v789_v28, %v787_v9  ;;  %v1575_v26 = vpop.eup %1574 }
 0x2ad   : > { %v742_v13 = vpop.xlane.xlu0 %741  ;;  %1584 = vrcp.f32 %v727_v14  ;;  %v799_v20 = vmul.f32 %v1575_v26, %v2183_v1 }
 0x2ae   : > { %v830_v12 = vpack.c.bf16 %v785_v33, %v783_v30 }
 0x2af   : > { %v1577_v3 = vpop.eup %1576 }
 0x2b0   : > { %1406 = vmatprep.mubr.msk.bf16.mxu1 %vm565_vm0, %v830_v12  ;;  %v745_v56 = vpop.xlane.xlu1 %744  ;;  %v801_v10 = vmul.f32 %v1577_v3, %v2194_v17 }
 0x2b1   : > { %v748_v45 = vpop.xlane.xlu0 %747  ;;  %1407 = vmatmul.mubr.msk.bf16.vlgmr.msra.gmra.mrb[8].mxu1 %vm565_vm0, %v831_v42  ;;  %1586 = vrcp.f32 %v745_v56 }
 0x2b2   : > { %1415 = vmatpush3.bf16.msra.mxu1 %v2284_v18  ;;  %1588 = vrcp.f32 %v742_v13 }
 0x2b3   : > { %1416 = vmatprep.subr.bf16.mxu1 %v871_v57  ;;  %v1579_v59 = vpop.eup %1578  ;;  %1590 = vrcp.f32 %v748_v45 }
 0x2b4   : > { %v757_v55 = vpop.xlane.xlu1 %756  ;;  %v1581_v61 = vpop.eup %1580  ;;  %v797_v8 = vmul.f32 %v1579_v59, %v2199_v24 }
 0x2b5   : > { %v754_v23 = vpop.xlane.xlu0 %753  ;;  %v1583_v38 = vpop.eup %1582  ;;  %v791_v6 = vmul.f32 %v1581_v61, %v2207_v29  ;;  %v834_v29 = vpack.c.bf16 %v801_v10, %v799_v20 }
 0x2b6   : > { %1417 = vmatpush3.bf16.msra.mxu1 %v871_v57  ;;  %1592 = vrcp.f32 %v754_v23  ;;  %v795_v43 = vmul.f32 %v1583_v38, %v2197_v19 }
 0x2b7   : > { %1418 = vmatprep.subr.bf16.mxu1 %v872_v48  ;;  %v1585_v5 = vpop.eup %1584 }
 0x2b8   : > { %v751_v18 = vpop.xlane.xlu1 %750  ;;  %v793_v11 = vmul.f32 %v1585_v5, %v2213_v37  ;;  %v833_v25 = vpack.c.bf16 %v797_v8, %v795_v43 }
 0x2b9   : > { %v766_v7 = vpop.xlane.xlu0 %765  ;;  %1594 = vrcp.f32 %v751_v18 }
 0x2ba   : > { %1419 = vmatpush3.bf16.msra.mxu1 %v872_v48  ;;  %1596 = vrcp.f32 %v757_v55  ;;  %v832_v44 = vpack.c.bf16 %v793_v11, %v791_v6 }
 0x2bb   : > { %1420 = vmatprep.subr.bf16.mxu1 %v873_v2  ;;  %v1587_v24 = vpop.eup %1586 }
 0x2bc   : > { %v769_v22 = vpop.xlane.xlu1 %768  ;;  %1410 = vmatprep.mubr.msk.bf16.mxu1 %vm565_vm0, %v832_v44  ;;  %v1589_v37 = vpop.eup %1588  ;;  %v805_v17 = vmul.f32 %v1587_v24, %v2223_v49 }
 0x2bd   : > { %v760_v21 = vpop.xlane.xlu0 %759  ;;  %1411 = vmatmul.mubr.msk.bf16.gmra.mrb[12].mxu1 %vm565_vm0, %v833_v25  ;;  %1598 = vrcp.f32 %v769_v22  ;;  %v1591_v27 = vpop.eup %1590  ;;  %v803_v28 = vmul.f32 %v1589_v37, %v2217_v39 }
 0x2be   : > { %1422 = vmatprep.mubr.msk.bf16.mxu1 %vm565_vm0, %v834_v29  ;;  %1421 = vmatpush3.bf16.msra.mxu1 %v873_v2  ;;  %1600 = vrcp.f32 %v760_v21  ;;  %v807_v9 = vmul.f32 %v1591_v27, %v2232_v54 }
 0x2bf   : > { %1446 = vmatprep.subr.bf16.mxu1 %v2299_v32  ;;  %1602 = vrcp.f32 %v766_v7  ;;  %v835_v30 = vpack.c.bf16 %v805_v17, %v803_v28 }
 0x2c0   : > { %v763_v1 = vpop.xlane.xlu1 %762  ;;  %v1593_v13 = vpop.eup %1592 }
 0x2c1   : > { %v772_v19 = vpop.xlane.xlu0 %771  ;;  %1604 = vrcp.f32 %v763_v1  ;;  %v811_v42 = vmul.f32 %v1593_v13, %v2244_v4 }
 0x2c2   : > { %1606 = vrcp.f32 %v772_v19 }
 0x2c3   : > { %v1595_v14 = vpop.eup %1594 }
 0x2c4   : > { %v775_v35 = vpop.xlane.xlu1 %774  ;;  %v1597_v50 = vpop.eup %1596  ;;  %v809_v49 = vmul.f32 %v1595_v14, %v2250_v16 }
 0x2c5   : > { %v778_v33 = vpop.xlane.xlu0 %777  ;;  %1608 = vrcp.f32 %v775_v35  ;;  %1423 = vmatmul.mubr.msk.bf16.vlgmr.msra.gmra.mrb[16].mxu1 %vm565_vm0, %v835_v30  ;;  %v813_v57 = vmul.f32 %v1597_v50, %v2238_v58 }
 0x2c6   : > { %1610 = vrcp.f32 %v778_v33  ;;  %v836_v12 = vpack.c.bf16 %v809_v49, %v807_v9  ;;  %1450 = vmatpush3.bf16.msra.mxu1 %v2299_v32 }
 0x2c7   : > { %1447 = vmatprep.subr.bf16.mxu1 %v2305_v0  ;;  %v1599_v45 = vpop.eup %1598  ;;  %v837_v52 = vpack.c.bf16 %v813_v57, %v811_v42 }
 0x2c8   : > { %v781_v39 = vpop.xlane.xlu1 %780  ;;  %1426 = vmatprep.mubr.msk.bf16.mxu1 %vm565_vm0, %v836_v12  ;;  %v1601_v54 = vpop.eup %1600  ;;  %v821_v60 = vmul.f32 %v1599_v45, %v2262_v47 }
 0x2c9   : > { %1612 = vrcp.f32 %v781_v39  ;;  %v1603_v16 = vpop.eup %1602  ;;  %v815_v32 = vmul.f32 %v1601_v54, %v2266_v34 }
 0x2ca   : > { %1451 = vmatpush3.bf16.msra.mxu1 %v2305_v0  ;;  %v819_v58 = vmul.f32 %v1603_v16, %v2256_v46 }
 0x2cb   : > { %v1605_v56 = vpop.eup %1604  ;;  %1448 = vmatprep.subr.bf16.mxu1 %v2311_v62 }
 0x2cc   : > { %v817_v4 = vmul.f32 %v1605_v56, %v2272_v36  ;;  %v1607_v26 = vpop.eup %1606  ;;  %v839_v0 = vpack.c.bf16 %v821_v60, %v819_v58 }
 0x2cd   : > { %1427 = vmatmul.mubr.msk.bf16.gmra.mrb[20].mxu1 %vm565_vm0, %v837_v52  ;;  %v823_v34 = vmul.f32 %v1607_v26, %v2274_v53 }
 0x2ce   : > { %1452 = vmatpush3.bf16.msra.mxu1 %v2311_v62  ;;  %v838_v48 = vpack.c.bf16 %v817_v4, %v815_v32 }
 0x2cf   : > { %v1609_v3 = vpop.eup %1608  ;;  %1449 = vmatprep.subr.bf16.mxu1 %v2317_v41 }
 0x2d0   : > { %v1611_v47 = vpop.eup %1610  ;;  %1438 = vmatprep.mubr.msk.bf16.mxu0 %vm565_vm0, %v838_v48  ;;  %v825_v36 = vmul.f32 %v1609_v3, %v2280_v40 }
 0x2d1   : > { %1439 = vmatmul.mubr.msk.bf16.vlgmr.msra.gmra.mrb[16].mxu0 %vm565_vm0, %v839_v0  ;;  %v827_v62 = vmul.f32 %v1611_v47, %v2286_v15 }
 0x2d2   : > { %1453 = vmatpush3.bf16.msra.mxu1 %v2317_v41  ;;  %v840_v23 = vpack.c.bf16 %v825_v36, %v823_v34 }
 0x2d3   : > { %v1613_v46 = vpop.eup %1612 }
 0x2d4   : > { %v829_v55 = vmul.f32 %v1613_v46, %v2293_v51  ;;  %1442 = vmatprep.mubr.msk.bf16.mxu1 %vm565_vm0, %v840_v23 }
 0x2d6   : > { %v841_v31 = vpack.c.bf16 %v829_v55, %v827_v62 }
 0x2d8   : > { %1443 = vmatmul.mubr.msk.bf16.vlgmr.msra.gmra.mrb[24].mxu1 %vm565_vm0, %v841_v31 }
 0x384   : > { %v1408_v63 = vpop.f32.mrb[8].mxu1 }
 0x385   : > { %1111 = vst [vmem:[%s2373_s7 + $0x10] sm:$0xff] %v1408_v63  ;;  %v924_v53 = vpop.f32.mrb[9].mxu1 }
 0x386   : > { %1109 = vst [vmem:[%s2373_s7] sm:$0xff] %v924_v53  ;;  %v1409_v40 = vpop.f32.mrb[10].mxu1 }
 0x387   : > { %1112 = vst [vmem:[%s2373_s7 + $0x18] sm:$0xff] %v1409_v40  ;;  %v927_v15 = vpop.f32.mrb[11].mxu1 }
 0x388   : > { %1110 = vst [vmem:[%s2373_s7 + $0x8] sm:$0xff] %v927_v15 }
 0x390   : > { %v1412_v51 = vpop.f32.mrb[12].mxu1 }
 0x391   : > { %1115 = vst [vmem:[%s2373_s7 + $0x30] sm:$0xff] %v1412_v51  ;;  %v940_v41 = vpop.f32.mrb[13].mxu1 }
 0x392   : > { %1113 = vst [vmem:[%s2373_s7 + $0x20] sm:$0xff] %v940_v41  ;;  %v1413_v59 = vpop.f32.mrb[14].mxu1 }
 0x393   : > { %1116 = vst [vmem:[%s2373_s7 + $0x38] sm:$0xff] %v1413_v59  ;;  %v943_v61 = vpop.f32.mrb[15].mxu1 }
 0x394   : > { %1114 = vst [vmem:[%s2373_s7 + $0x28] sm:$0xff] %v943_v61 }
 0x398   : > { %v1424_v38 = vpop.f32.mrb[16].mxu1 }
 0x399   : > { %1119 = vst [vmem:[%s2373_s7 + $0x50] sm:$0xff] %v1424_v38  ;;  %v1001_v2 = vpop.f32.mrb[17].mxu1 }
 0x39a   : > { %1117 = vst [vmem:[%s2373_s7 + $0x40] sm:$0xff] %v1001_v2  ;;  %v1425_v5 = vpop.f32.mrb[18].mxu1 }
 0x39b   : > { %1120 = vst [vmem:[%s2373_s7 + $0x58] sm:$0xff] %v1425_v5  ;;  %v1004_v7 = vpop.f32.mrb[19].mxu1 }
 0x39c   : > { %1118 = vst [vmem:[%s2373_s7 + $0x48] sm:$0xff] %v1004_v7 }
 0x3a0   : > { %v1428_v18 = vpop.f32.mrb[20].mxu1 }
 0x3a1   : > { %1123 = vst [vmem:[%s2373_s7 + $0x70] sm:$0xff] %v1428_v18  ;;  %v1017_v8 = vpop.f32.mrb[21].mxu1 }
 0x3a2   : > { %1121 = vst [vmem:[%s2373_s7 + $0x60] sm:$0xff] %v1017_v8  ;;  %v1429_v6 = vpop.f32.mrb[22].mxu1 }
 0x3a3   : > { %1124 = vst [vmem:[%s2373_s7 + $0x78] sm:$0xff] %v1429_v6  ;;  %v1020_v11 = vpop.f32.mrb[23].mxu1 }
 0x3a4   : > { %1122 = vst [vmem:[%s2373_s7 + $0x68] sm:$0xff] %v1020_v11  ;;  %v1440_v10 = vpop.f32.mrb[16].mxu0 }
 0x3a5   : > { %1127 = vst [vmem:[%s2373_s7 + $0x90] sm:$0xff] %v1440_v10  ;;  %v1078_v43 = vpop.f32.mrb[17].mxu0 }
 0x3a6   : > { %1125 = vst [vmem:[%s2373_s7 + $0x80] sm:$0xff] %v1078_v43  ;;  %v1441_v44 = vpop.f32.mrb[18].mxu0 }
 0x3a7   : > { %1128 = vst [vmem:[%s2373_s7 + $0x98] sm:$0xff] %v1441_v44  ;;  %v1081_v20 = vpop.f32.mrb[19].mxu0 }
 0x3a8   : > { %1126 = vst [vmem:[%s2373_s7 + $0x88] sm:$0xff] %v1081_v20 }
 0x3ab   : > { %v1444_v21 = vpop.f32.mrb[24].mxu1 }
 0x3ac   : > { %1131 = vst [vmem:[%s2373_s7 + $0xb0] sm:$0xff] %v1444_v21  ;;  %v1094_v22 = vpop.f32.mrb[25].mxu1 }
 0x3ad   : > { %1129 = vst [vmem:[%s2373_s7 + $0xa0] sm:$0xff] %v1094_v22  ;;  %v1445_v25 = vpop.f32.mrb[26].mxu1 }
 0x3ae   : > { %1132 = vst [vmem:[%s2373_s7 + $0xb8] sm:$0xff] %v1445_v25  ;;  %v1097_v24 = vpop.f32.mrb[27].mxu1 }
 0x3af   : > { %1130 = vst [vmem:[%s2373_s7 + $0xa8] sm:$0xff] %v1097_v24 }
 0x3b0   : > { %1717 = shalt.err (!%p1714_p10)
}
 0x3b1   : > { %s1718_s20 = scalar_lea.hbm %s2401_s5, 3072  ;;  %s1722_s9 = scalar_lea.hbm %s2453_s3, 6144 }
 0x3b2   : > { %p1719_p11 = scmp.ne.s32.totalorder %s2401_s5, %s1718_s20  ;;  %p1723_p5 = scmp.lt.u32.totalorder %s2401_s5, %s2453_s3 }
 0x3b3   : > { %p1724_p2 = scmp.lt.u32.totalorder %s1722_s9, %s1718_s20  ;;  %p1726_p13 = scmp.lt.u32.totalorder %s1718_s20, %s2401_s5 }
 0x3b4   : > { %p1720_p4 = pnand %p1719_p11, %p2473_p7 }
 0x3b5   : > { %p1725_p1 = por %p1724_p2, %p1723_p5 }
 0x3b6   : > { %p1721_p3 = pneg %p1720_p4 }
 0x3b7   : > { %p1727_p6 = por %p1726_p13, %p1725_p1 }
 0x3b9   : > { %p1728_p9 = pnand %p1727_p6, %p1721_p3 }
 0x3bb   : > { %1731 = shalt.err (!%p1728_p9)
}
 0x3bc   : > { %s1782_s17 = smov 128   ;;  %s1783_s22 = smov 8  }
 0x3bd   : > { %1464 = dma.vmem_to_hbm [thread:$0]  (%p2473_p7), %s2403_s11, 3072, %s2401_s5, %s1134_s16, %s1782_s17, %s1782_s17, %s1783_s22  }
 0x3be PF: > { %s1163_s7 = sand.u32 1, %s1762_s12   ;;  %p2474_p12 = scmp.ne.s32.totalorder %s2463_s24, 0 }
 0x3bf   : > { %p2475_p0 = scmp.ge.s32.totalorder %s1774_s15, 2  ;;  %s1164_s4 = scalar_lea.sflag [#allocation4], %s1163_s7 }
 0x3c1   : > { %p1477_p8 = pnand %p2475_p0, %p2474_p12 }
 0x3c3   : > { %1757 = dma.done.wait (!%p1477_p8), %s1164_s4, 3072  }
 0x3c4   : > { %1759 = vsyncadd (!%p1477_p8), %s1164_s4, 4294964224  ;;  %p19_p10 = scmp.ge.s32.totalorder %s1829_s18, 4   ;;  %s2476_s12 = smov %s1766_s13 }
 0x3c5   : > { %s2477_s13 = smov %s1770_s14  ;;  %s2478_s14 = smov %s1841_s21 }
 0x3c6   : > { %s2479_s15 = smov %s1829_s18  ;;  %21 = sbr.rel (!%p19_p10) target bundleno = 9 (0x9), region = 101 }
 0x3cd   :  { %1169 = vsyncpa [#allocation3], 1 }
 0x3ce   :  { %1171 = vsyncpa [#allocation3 + $0x1], 1 }
 0x3cf   :  { %1172 = vsyncpa [#allocation6], 1 }
 0x3d0   :  { %1174 = vsyncpa [#allocation6 + $0x1], 1 }
 0x3d1   :  { %1175 = vsyncpa [#allocation4], 1 }
 0x3d2   :  { %1177 = vsyncpa [#allocation4 + $0x1], 1 }

</bundles_post_ra>
